<compile_context>
chip_gen: v6e
topology: v6e:2x2x1
jax: 0.10.0
libtpu: 0.0.40
codegen_flags: <defaults>
</compile_context>

<pallas_src>
import jax
import jax.numpy as jnp
from jax.experimental import pallas as pl
from jax.experimental.pallas import tpu as pltpu

HIDDEN1 = 128
HIDDEN2 = 84          # logical fc2 width (as in the PyTorch module)
HIDDEN2_PAD = 128     # lane-dense padded width used inside the kernel


def actor_mlp_kernel(x_ref, w1_ref, b1_ref, w2_ref, b2_ref, w3_ref, b3_ref,
                     out_ref):
    x = x_ref[...]                                                     # (TB, D_in)
    h1 = jnp.dot(x, w1_ref[...], preferred_element_type=jnp.float32)   # (TB, 128)
    h1 = jnp.maximum(h1 + b1_ref[...], 0.0)                            # ReLU
    h2 = jnp.dot(h1, w2_ref[...], preferred_element_type=jnp.float32)  # (TB, 128) padded
    h2 = jnp.maximum(h2 + b2_ref[...], 0.0)                            # ReLU (pad lanes stay 0)
    out = jnp.dot(h2, w3_ref[...], preferred_element_type=jnp.float32)  # (TB, D_out)
    out_ref[...] = out + b3_ref[...]


def _choose_batch_tile(batch, requested):
    """Pick the batch tile.

    Small batches: one full-array block (block_shape == array dims, so no
    (8,128) divisibility constraint and no boundary masking).
    Large batches: big tile (amortizes the ~0.35us/step grid overhead), capped
    so the grid keeps >= 2 steps (v7x: 2 TensorCores share the 'parallel'
    axis), rounded to a multiple of 256 for clean MXU passes.
    """
    small_cutoff = max(256, min(requested, 1024))
    if batch <= small_cutoff:
        return batch
    cap = (batch + 1) // 2                     # keep >= 2 grid steps
    tb = min(requested, cap)
    if tb >= 256:
        tb = (tb // 256) * 256
    else:
        tb = max(8, (tb // 8) * 8)
    return tb


def actor_forward(x, params, *, batch_tile=2048):
    """x: (batch, input_dim) float32. params: dict of w1,b1,w2,b2,w3,b3
    (w2/b2/w3 already zero-padded to the 128-wide hidden dim)."""
    w1, b1 = params["w1"], params["b1"]
    w2, b2 = params["w2"], params["b2"]
    w3, b3 = params["w3"], params["b3"]
    batch, in_dim = x.shape
    out_dim = w3.shape[1]

    tb = _choose_batch_tile(batch, batch_tile)
    grid = (pl.cdiv(batch, tb),)   # ragged last block handled by Pallas masking

    def pinned(shape):
        # Constant block index => weights/biases DMA'd once, stay VMEM-resident.
        return pl.BlockSpec(shape, lambda i: (0, 0))

    param_bytes = sum(int(p.size) * p.dtype.itemsize
                      for p in (w1, b1, w2, b2, w3, b3))
    cost = pl.CostEstimate(
        flops=2 * batch * (in_dim * HIDDEN1
                           + HIDDEN1 * HIDDEN2_PAD
                           + HIDDEN2_PAD * out_dim),
        transcendentals=0,
        bytes_accessed=batch * (in_dim + out_dim) * 4 + param_bytes,
    )

    out = pl.pallas_call(
        actor_mlp_kernel,
        out_shape=jax.ShapeDtypeStruct((batch, out_dim), jnp.float32),
        grid=grid,
        in_specs=[
            pl.BlockSpec((tb, in_dim), lambda i: (i, 0)),   # x: streamed by batch tile
            pinned(w1.shape), pinned(b1.shape),
            pinned(w2.shape), pinned(b2.shape),
            pinned(w3.shape), pinned(b3.shape),
        ],
        out_specs=pl.BlockSpec((tb, out_dim), lambda i: (i, 0)),
        compiler_params=pltpu.CompilerParams(
            dimension_semantics=("parallel",),
            vmem_limit_bytes=32 * 1024 * 1024),
        cost_estimate=cost,
    )(x, w1, b1, w2, b2, w3, b3)
    return out


def init_actor_params(key, input_dim, output_dim):
    """Deterministic init mimicking nn.Linear's U(-1/sqrt(fan_in), 1/sqrt(fan_in)).

    Weights are stored transposed, i.e. (in_features, out_features).
    The 84-wide hidden dim is zero-padded to 128 (w2 cols, b2, w3 rows) so the
    kernel's matmuls are lane-dense; the padding is mathematically inert."""
    dims = [(input_dim, HIDDEN1), (HIDDEN1, HIDDEN2), (HIDDEN2, output_dim)]
    params = {}
    keys = jax.random.split(key, 2 * len(dims))
    for i, (fan_in, fan_out) in enumerate(dims):
        bound = 1.0 / jnp.sqrt(jnp.float32(fan_in))
        w = jax.random.uniform(keys[2 * i], (fan_in, fan_out),
                               minval=-bound, maxval=bound, dtype=jnp.float32)
        b = jax.random.uniform(keys[2 * i + 1], (1, fan_out),
                               minval=-bound, maxval=bound, dtype=jnp.float32)
        params[f"w{i + 1}"] = w
        params[f"b{i + 1}"] = b

    # Zero-pad the hidden-84 dimension to 128 (identical math).
    pad = HIDDEN2_PAD - HIDDEN2
    params["w2"] = jnp.pad(params["w2"], ((0, 0), (0, pad)))   # (128, 128)
    params["b2"] = jnp.pad(params["b2"], ((0, 0), (0, pad)))   # (1, 128)
    params["w3"] = jnp.pad(params["w3"], ((0, pad), (0, 0)))   # (128, out_dim)
    return params


def _reference(x, params):
    """Plain-JAX reference using the UNPADDED (original PyTorch) semantics."""
    w1, b1 = params["w1"], params["b1"]
    w2, b2 = params["w2"][:, :HIDDEN2], params["b2"][:, :HIDDEN2]
    w3, b3 = params["w3"][:HIDDEN2, :], params["b3"]
    h1 = jnp.maximum(x @ w1 + b1, 0.0)
    h2 = jnp.maximum(h1 @ w2 + b2, 0.0)
    return h2 @ w3 + b3


if __name__ == "__main__":
    key = jax.random.PRNGKey(0)
    k_param, k_x1, k_x2, k_x3 = jax.random.split(key, 4)

    input_dim = 32
    output_dim = 8
    params = init_actor_params(k_param, input_dim, output_dim)

    # Small-batch case: single full-array block, grid=(1,).
    batch = 2
    x = jax.random.normal(k_x1, (batch, input_dim), dtype=jnp.float32)
    out = jax.block_until_ready(actor_forward(x, params))
    ref = _reference(x, params)
    assert out.shape == (batch, output_dim)
    assert jnp.allclose(out, ref, atol=1e-5, rtol=1e-5)

    # Mid batch with a small requested tile: grid=3 with a ragged (44-row)
    # last block handled by Pallas boundary masking (no pad/slice copies).
    batch_mid = 300
    x_mid = jax.random.normal(k_x2, (batch_mid, input_dim), dtype=jnp.float32)
    out_mid = jax.block_until_ready(actor_forward(x_mid, params, batch_tile=128))
    ref_mid = _reference(x_mid, params)
    assert out_mid.shape == (batch_mid, output_dim)
    assert jnp.allclose(out_mid, ref_mid, atol=1e-5, rtol=1e-5)

    # Large batch with the default (2048-row) tile: grid=3, heavily-ragged
    # (4-row) last block, exercises the large-tile + masked-tail path.
    batch_big = 4100
    x_big = jax.random.normal(k_x3, (batch_big, input_dim), dtype=jnp.float32)
    out_big = jax.block_until_ready(actor_forward(x_big, params))
    ref_big = _reference(x_big, params)
    assert out_big.shape == (batch_big, output_dim)
    assert jnp.allclose(out_big, ref_big, atol=1e-5, rtol=1e-5)

    print("KERNEL_OK")
</pallas_src>

<mosaic_0001>
module attributes {stable_mosaic.version = 11 : i64} {
  func.func @actor_mlp_kernel(%arg0: i32, %arg1: memref<2x32xf32, #tpu.memory_space<vmem>>, %arg2: memref<32x128xf32, #tpu.memory_space<vmem>>, %arg3: memref<1x128xf32, #tpu.memory_space<vmem>>, %arg4: memref<128x128xf32, #tpu.memory_space<vmem>>, %arg5: memref<1x128xf32, #tpu.memory_space<vmem>>, %arg6: memref<128x8xf32, #tpu.memory_space<vmem>>, %arg7: memref<1x8xf32, #tpu.memory_space<vmem>>, %arg8: memref<2x8xf32, #tpu.memory_space<vmem>>) attributes {dimension_semantics = [#tpu.dimension_semantics<parallel>], iteration_bounds = array<i64: 1>, scalar_prefetch = 0 : i64, scratch_operands = 0 : i64, tpu.core_type = #tpu.core_type<tc>, window_params = [{transform_indices = @transform_0, window_bounds = array<i64: 2, 32>}, {pipeline_mode = #tpu.pipeline_mode<synchronous>, transform_indices = @transform_1, window_bounds = array<i64: 32, 128>}, {pipeline_mode = #tpu.pipeline_mode<synchronous>, transform_indices = @transform_2, window_bounds = array<i64: 1, 128>}, {pipeline_mode = #tpu.pipeline_mode<synchronous>, transform_indices = @transform_3, window_bounds = array<i64: 128, 128>}, {pipeline_mode = #tpu.pipeline_mode<synchronous>, transform_indices = @transform_4, window_bounds = array<i64: 1, 128>}, {pipeline_mode = #tpu.pipeline_mode<synchronous>, transform_indices = @transform_5, window_bounds = array<i64: 128, 8>}, {pipeline_mode = #tpu.pipeline_mode<synchronous>, transform_indices = @transform_6, window_bounds = array<i64: 1, 8>}, {transform_indices = @transform_7, window_bounds = array<i64: 2, 8>}]} {
    %c0 = arith.constant 0 : index
    %c0_0 = arith.constant 0 : index
    %0 = vector.load %arg1[%c0, %c0_0] : memref<2x32xf32, #tpu.memory_space<vmem>>, vector<2x32xf32>
    %c0_1 = arith.constant 0 : index
    %c0_2 = arith.constant 0 : index
    %1 = vector.load %arg2[%c0_1, %c0_2] : memref<32x128xf32, #tpu.memory_space<vmem>>, vector<32x128xf32>
    %cst = arith.constant dense<0.000000e+00> : vector<2x128xf32>
    %2 = tpu.matmul %0, %1, %cst {dimension_numbers = #tpu.dot_dimension_numbers<[1], [0], [0], [1], [0, 0, 1, 1], [], []>} : vector<2x32xf32>, vector<32x128xf32>, vector<2x128xf32> -> vector<2x128xf32>
    %c0_3 = arith.constant 0 : index
    %c0_4 = arith.constant 0 : index
    %3 = vector.load %arg3[%c0_3, %c0_4] : memref<1x128xf32, #tpu.memory_space<vmem>>, vector<1x128xf32>
    %4 = vector.broadcast %3 : vector<1x128xf32> to vector<2x128xf32>
    %5 = arith.addf %2, %4 : vector<2x128xf32>
    %cst_5 = arith.constant 0.000000e+00 : f32
    %6 = vector.broadcast %cst_5 : f32 to vector<2x128xf32>
    %7 = arith.maximumf %5, %6 : vector<2x128xf32>
    %c0_6 = arith.constant 0 : index
    %c0_7 = arith.constant 0 : index
    %8 = vector.load %arg4[%c0_6, %c0_7] : memref<128x128xf32, #tpu.memory_space<vmem>>, vector<128x128xf32>
    %cst_8 = arith.constant dense<0.000000e+00> : vector<2x128xf32>
    %9 = tpu.matmul %7, %8, %cst_8 {dimension_numbers = #tpu.dot_dimension_numbers<[1], [0], [0], [1], [0, 0, 1, 1], [], []>} : vector<2x128xf32>, vector<128x128xf32>, vector<2x128xf32> -> vector<2x128xf32>
    %c0_9 = arith.constant 0 : index
    %c0_10 = arith.constant 0 : index
    %10 = vector.load %arg5[%c0_9, %c0_10] : memref<1x128xf32, #tpu.memory_space<vmem>>, vector<1x128xf32>
    %11 = vector.broadcast %10 : vector<1x128xf32> to vector<2x128xf32>
    %12 = arith.addf %9, %11 : vector<2x128xf32>
    %cst_11 = arith.constant 0.000000e+00 : f32
    %13 = vector.broadcast %cst_11 : f32 to vector<2x128xf32>
    %14 = arith.maximumf %12, %13 : vector<2x128xf32>
    %c0_12 = arith.constant 0 : index
    %c0_13 = arith.constant 0 : index
    %15 = vector.load %arg6[%c0_12, %c0_13] : memref<128x8xf32, #tpu.memory_space<vmem>>, vector<128x8xf32>
    %cst_14 = arith.constant dense<0.000000e+00> : vector<2x8xf32>
    %16 = tpu.matmul %14, %15, %cst_14 {dimension_numbers = #tpu.dot_dimension_numbers<[1], [0], [0], [1], [0, 0, 1, 1], [], []>} : vector<2x128xf32>, vector<128x8xf32>, vector<2x8xf32> -> vector<2x8xf32>
    %c0_15 = arith.constant 0 : index
    %c0_16 = arith.constant 0 : index
    %17 = vector.load %arg7[%c0_15, %c0_16] : memref<1x8xf32, #tpu.memory_space<vmem>>, vector<1x8xf32>
    %18 = vector.broadcast %17 : vector<1x8xf32> to vector<2x8xf32>
    %19 = arith.addf %16, %18 : vector<2x8xf32>
    %c0_17 = arith.constant 0 : index
    %c0_18 = arith.constant 0 : index
    %20 = vector.load %arg8[%c0_17, %c0_18] : memref<2x8xf32, #tpu.memory_space<vmem>>, vector<2x8xf32>
    tpu.vector_store %arg8[%c0_17, %c0_18], %19 {strides = array<i32>} : memref<2x8xf32, #tpu.memory_space<vmem>>, vector<2x8xf32>,
    return
  }
  func.func @transform_0(%arg0: i32) -> (i32, i32) {
    %c0_i32 = arith.constant 0 : i32
    %c0_i32_0 = arith.constant 0 : i32
    return %arg0, %c0_i32 : i32, i32
  }
  func.func @transform_1(%arg0: i32) -> (i32, i32) {
    %c0_i32 = arith.constant 0 : i32
    %c0_i32_0 = arith.constant 0 : i32
    %c0_i32_1 = arith.constant 0 : i32
    return %c0_i32, %c0_i32_0 : i32, i32
  }
  func.func @transform_2(%arg0: i32) -> (i32, i32) {
    %c0_i32 = arith.constant 0 : i32
    %c0_i32_0 = arith.constant 0 : i32
    %c0_i32_1 = arith.constant 0 : i32
    return %c0_i32, %c0_i32_0 : i32, i32
  }
  func.func @transform_3(%arg0: i32) -> (i32, i32) {
    %c0_i32 = arith.constant 0 : i32
    %c0_i32_0 = arith.constant 0 : i32
    %c0_i32_1 = arith.constant 0 : i32
    return %c0_i32, %c0_i32_0 : i32, i32
  }
  func.func @transform_4(%arg0: i32) -> (i32, i32) {
    %c0_i32 = arith.constant 0 : i32
    %c0_i32_0 = arith.constant 0 : i32
    %c0_i32_1 = arith.constant 0 : i32
    return %c0_i32, %c0_i32_0 : i32, i32
  }
  func.func @transform_5(%arg0: i32) -> (i32, i32) {
    %c0_i32 = arith.constant 0 : i32
    %c0_i32_0 = arith.constant 0 : i32
    %c0_i32_1 = arith.constant 0 : i32
    return %c0_i32, %c0_i32_0 : i32, i32
  }
  func.func @transform_6(%arg0: i32) -> (i32, i32) {
    %c0_i32 = arith.constant 0 : i32
    %c0_i32_0 = arith.constant 0 : i32
    %c0_i32_1 = arith.constant 0 : i32
    return %c0_i32, %c0_i32_0 : i32, i32
  }
  func.func @transform_7(%arg0: i32) -> (i32, i32) {
    %c0_i32 = arith.constant 0 : i32
    %c0_i32_0 = arith.constant 0 : i32
    return %arg0, %c0_i32 : i32, i32
  }
}

</mosaic_0001>

<bundles_post_ra>
// kernel: tpu_custom_call.1
= control target key start
LH: loop header
LB: loop body
LE: loop exit
PB: predicated region body
PF: predicated region fallthrough
CT: control target
= control target key end

     0   :  { %12 = vsyncpa [#allocation3], 0  ;;  %s708_s0 = inlined_call_operand.vmem [shape: f32[2,32], index: 0, kind: input, shape index: {}]   ;;  %s709_s1 = inlined_call_operand.hbm [shape: f32[32,128], index: 1, kind: input, shape index: {}]   ;;  %s710_s2 = inlined_call_operand.vmem [shape: f32[1,128], index: 2, kind: input, shape index: {}]   ;;  %s711_s3 = inlined_call_operand.vmem [shape: f32[128,128], index: 3, kind: input, shape index: {}]   ;;  %s712_s4 = inlined_call_operand.vmem [shape: f32[1,128], index: 4, kind: input, shape index: {}]   ;;  %s713_s5 = inlined_call_operand.vmem [shape: f32[128,8], index: 5, kind: input, shape index: {}]   ;;  %s714_s6 = inlined_call_operand.vmem [shape: f32[1,8], index: 6, kind: input, shape index: {}]   ;;  %s715_s7 = inlined_call_operand.hbm [shape: f32[2,8], index: 7, kind: output, shape index: {}]  }
   0x1   :  { %13 = vsyncpa [#allocation4], 0  ;;  %s506_s24 = smov [#allocation2]  }
   0x2   :  { %s21_s25 = sshll.u32 %s506_s24, 4  ;;  %s22_s25 = int_to_ptr.vmem [resolvable:$true] %s21_s25 }
   0x3   :  { %s470_s26 = scalar_lea.vmem %s22_s25, 512  ;;  %p475_p1 = scmp.lt.s32.totalorder %s22_s25, %s22_s25 }
   0x4   :  { %p471_p0 = scmp.ne.s32.totalorder %s22_s25, %s470_s26  ;;  %p476_p2 = scmp.lt.s32.totalorder %s470_s26, %s470_s26 }
   0x6   :  { %p477_p3 = por %p476_p2, %p475_p1 }
   0x8   :  { %p478_p4 = pnand %p477_p3, %p471_p0 }
   0xa   :  { %481 = shalt.err (!%p478_p4)
}
   0xb   :  { %s507_s27 = smov 128   ;;  %s508_s28 = smov 8  }
   0xc   :  { %27 = dma.hbm_to_vmem [thread:$0]  %s709_s1, 512, %s22_s25, [#allocation3], %s507_s27, %s507_s27, %s508_s28  }
   0xd   :  { %502 = dma.done.wait [#allocation3], 512  }
   0xe   :  { %503 = vsyncadd [#allocation3], 4294966784  ;;  %v509_v0 = vmov 0.0   ;;  %vm510_vm0 = vmmov 0   ;;  %v45_v1 = vld [vmem:[#allocation2 + $0x18] sm:$0xff]  ;;  %v44_v2 = vld [vmem:[#allocation2 + $0x10] sm:$0xff] }
   0xf   :  { %375 = vmatprep.subr.mxu0 %v509_v0  ;;  %383 = vmatprep.mubr.msk.f32.mxu0 %vm510_vm0, %v509_v0  ;;  %v143_v3 = vld [vmem:[%s711_s3 + $0x78] sm:$0xff]  ;;  %v43_v4 = vld [vmem:[#allocation2 + $0x8] sm:$0xff]  ;;  %v142_v5 = vld [vmem:[%s711_s3 + $0x70] sm:$0xff]  ;;  %vm53_vm1 = vcmask 261120   ;;  %s511_s25 = smov [#allocation5]   ;;  %vm315_vm2 = vcmask 58368  }
  0x10   :  { %386 = vmatprep.subr.mxu1 %v509_v0  ;;  %418 = vmatprep.mubr.msk.f32.mxu1 %vm510_vm0, %v509_v0  ;;  %v141_v6 = vld [vmem:[%s711_s3 + $0x68] sm:$0xff]  ;;  %v42_v7 = vld [vmem:[#allocation2] sm:$0xff]  ;;  %v139_v10 = vld [vmem:[%s711_s3 + $0x58] sm:$0xff]  ;;  %s323_s26 = sshll.u32 %s511_s25, 4  ;;  %s324_s26 = int_to_ptr.vmem [resolvable:$true] %s323_s26 }
  0x11   :  { %376 = vmatpush3.msra.mxu0 %v45_v1  ;;  %387 = vmatpush3.msra.mxu1 %v143_v3  ;;  %v41_v8 = vld [vmem:[%s708_s0] sm:$0x3]  ;;  %v138_v11 = vld [vmem:[%s711_s3 + $0x50] sm:$0xff]  ;;  %v137_v12 = vld [vmem:[%s711_s3 + $0x48] sm:$0xff]  ;;  %p487_p6 = scmp.lt.s32.totalorder %s324_s26, %s324_s26 }
  0x12   :  { %377 = vmatprep.subr.mxu0 %v509_v0  ;;  %388 = vmatprep.subr.mxu1 %v509_v0  ;;  %v140_v9 = vld [vmem:[%s711_s3 + $0x60] sm:$0xff]  ;;  %v135_v14 = vld [vmem:[%s711_s3 + $0x38] sm:$0xff]  ;;  %v134_v15 = vld [vmem:[%s711_s3 + $0x30] sm:$0xff] }
  0x13   :  { %378 = vmatpush3.msra.mxu0 %v44_v2  ;;  %389 = vmatpush3.msra.mxu1 %v142_v5  ;;  %v136_v13 = vld [vmem:[%s711_s3 + $0x40] sm:$0xff]  ;;  %v133_v16 = vld [vmem:[%s711_s3 + $0x28] sm:$0xff]  ;;  %v131_v18 = vld [vmem:[%s711_s3 + $0x18] sm:$0xff] }
  0x14   :  { %379 = vmatprep.subr.mxu0 %v509_v0  ;;  %390 = vmatprep.subr.mxu1 %v509_v0  ;;  %v132_v17 = vld [vmem:[%s711_s3 + $0x20] sm:$0xff]  ;;  %v130_v19 = vld [vmem:[%s711_s3 + $0x10] sm:$0xff]  ;;  %v129_v20 = vld [vmem:[%s711_s3 + $0x8] sm:$0xff] }
  0x15   :  { %380 = vmatpush3.msra.mxu0 %v43_v4  ;;  %391 = vmatpush3.msra.mxu1 %v141_v6  ;;  %v128_v21 = vld [vmem:[%s711_s3] sm:$0xff]  ;;  %v237_v22 = vld [vmem:[%s713_s5 + $0x78] sm:$0xff]  ;;  %v236_v23 = vld [vmem:[%s713_s5 + $0x70] sm:$0xff] }
  0x16   :  { %381 = vmatprep.subr.mxu0 %v509_v0  ;;  %392 = vmatprep.subr.mxu1 %v509_v0  ;;  %v235_v24 = vld [vmem:[%s713_s5 + $0x68] sm:$0xff]  ;;  %v234_v25 = vld [vmem:[%s713_s5 + $0x60] sm:$0xff]  ;;  %v233_v26 = vld [vmem:[%s713_s5 + $0x58] sm:$0xff] }
  0x17   :  { %382 = vmatpush3.msra.mxu0 %v42_v7  ;;  %393 = vmatpush3.msra.mxu1 %v140_v9  ;;  %v232_v27 = vld [vmem:[%s713_s5 + $0x50] sm:$0xff]  ;;  %v231_v28 = vld [vmem:[%s713_s5 + $0x48] sm:$0xff]  ;;  %v230_v29 = vld [vmem:[%s713_s5 + $0x40] sm:$0xff] }
  0x18   :  { %384 = vmatmul.mubr.msk.f32.vlgmr.msra.gmra.mxu0 %vm53_vm1, %v41_v8  ;;  %394 = vmatprep.subr.mxu1 %v509_v0  ;;  %v229_v30 = vld [vmem:[%s713_s5 + $0x38] sm:$0xff]  ;;  %v228_v31 = vld [vmem:[%s713_s5 + $0x30] sm:$0xff]  ;;  %v227_v32 = vld [vmem:[%s713_s5 + $0x28] sm:$0xff] }
  0x19   :  { %421 = vmatprep.subr.mxu0 %v509_v0  ;;  %395 = vmatpush3.msra.mxu1 %v139_v10  ;;  %v226_v33 = vld [vmem:[%s713_s5 + $0x20] sm:$0xff]  ;;  %v225_v34 = vld [vmem:[%s713_s5 + $0x18] sm:$0xff]  ;;  %v224_v40 = vld [vmem:[%s713_s5 + $0x10] sm:$0xff] }
  0x1a   :  { %453 = vmatprep.mubr.msk.f32.mxu0 %vm510_vm0, %v509_v0  ;;  %396 = vmatprep.subr.mxu1 %v509_v0  ;;  %v332_v35 = vld [vmem:[%s710_s2] ss:$0 sm:$0xff]  ;;  %v223_v41 = vld [vmem:[%s713_s5 + $0x8] sm:$0xff] }
  0x1b   :  { %397 = vmatpush3.msra.mxu1 %v138_v11  ;;  %422 = vmatpush3.msra.mxu0 %v237_v22  ;;  %v222_v42 = vld [vmem:[%s713_s5] sm:$0xff]  ;;  %s482_s5 = scalar_lea.vmem %s324_s26, 32 }
  0x1c   :  { %398 = vmatprep.subr.mxu1 %v509_v0  ;;  %423 = vmatprep.subr.mxu0 %v509_v0  ;;  %v334_v43 = vld [vmem:[%s712_s4] ss:$0 sm:$0xff]  ;;  %p483_p5 = scmp.ne.s32.totalorder %s324_s26, %s482_s5  ;;  %p488_p7 = scmp.lt.s32.totalorder %s482_s5, %s482_s5 }
  0x1d   :  { %399 = vmatpush3.msra.mxu1 %v137_v12  ;;  %424 = vmatpush3.msra.mxu0 %v236_v23  ;;  %v335_v48 = vld [vmem:[%s714_s6] ss:$0 sm:$0xff] }
  0x1e   :  { %400 = vmatprep.subr.mxu1 %v509_v0  ;;  %425 = vmatprep.subr.mxu0 %v509_v0  ;;  %p489_p8 = por %p488_p7, %p487_p6 }
  0x1f   :  { %401 = vmatpush3.msra.mxu1 %v136_v13  ;;  %426 = vmatpush3.msra.mxu0 %v235_v24 }
  0x20   :  { %402 = vmatprep.subr.mxu1 %v509_v0  ;;  %427 = vmatprep.subr.mxu0 %v509_v0  ;;  %p490_p9 = pnand %p489_p8, %p483_p5 }
  0x21   :  { %403 = vmatpush3.msra.mxu1 %v135_v14  ;;  %428 = vmatpush3.msra.mxu0 %v234_v25 }
  0x22   :  { %404 = vmatprep.subr.mxu1 %v509_v0  ;;  %429 = vmatprep.subr.mxu0 %v509_v0 }
  0x23   :  { %405 = vmatpush3.msra.mxu1 %v134_v15  ;;  %430 = vmatpush3.msra.mxu0 %v233_v26 }
  0x24   :  { %406 = vmatprep.subr.mxu1 %v509_v0  ;;  %431 = vmatprep.subr.mxu0 %v509_v0 }
  0x25   :  { %407 = vmatpush3.msra.mxu1 %v133_v16  ;;  %432 = vmatpush3.msra.mxu0 %v232_v27 }
  0x26   :  { %408 = vmatprep.subr.mxu1 %v509_v0  ;;  %433 = vmatprep.subr.mxu0 %v509_v0 }
  0x27   :  { %409 = vmatpush3.msra.mxu1 %v132_v17  ;;  %434 = vmatpush3.msra.mxu0 %v231_v28 }
  0x28   :  { %410 = vmatprep.subr.mxu1 %v509_v0  ;;  %435 = vmatprep.subr.mxu0 %v509_v0 }
  0x29   :  { %411 = vmatpush3.msra.mxu1 %v131_v18  ;;  %436 = vmatpush3.msra.mxu0 %v230_v29 }
  0x2a   :  { %412 = vmatprep.subr.mxu1 %v509_v0  ;;  %437 = vmatprep.subr.mxu0 %v509_v0 }
  0x2b   :  { %413 = vmatpush3.msra.mxu1 %v130_v19  ;;  %438 = vmatpush3.msra.mxu0 %v229_v30 }
  0x2c   :  { %414 = vmatprep.subr.mxu1 %v509_v0  ;;  %439 = vmatprep.subr.mxu0 %v509_v0 }
  0x2d   :  { %415 = vmatpush3.msra.mxu1 %v129_v20  ;;  %440 = vmatpush3.msra.mxu0 %v228_v31 }
  0x2e   :  { %416 = vmatprep.subr.mxu1 %v509_v0  ;;  %441 = vmatprep.subr.mxu0 %v509_v0 }
  0x2f   :  { %417 = vmatpush3.msra.mxu1 %v128_v21  ;;  %442 = vmatpush3.msra.mxu0 %v227_v32 }
  0x30   :  { %443 = vmatprep.subr.mxu0 %v509_v0 }
  0x31   :  { %444 = vmatpush3.msra.mxu0 %v226_v33 }
  0x32   :  { %445 = vmatprep.subr.mxu0 %v509_v0 }
  0x33   :  { %446 = vmatpush3.msra.mxu0 %v225_v34 }
  0x34   :  { %447 = vmatprep.subr.mxu0 %v509_v0 }
  0x35   :  { %448 = vmatpush3.msra.mxu0 %v224_v40 }
  0x36   :  { %449 = vmatprep.subr.mxu0 %v509_v0 }
  0x37   :  { %450 = vmatpush3.msra.mxu0 %v223_v41 }
  0x38   :  { %451 = vmatprep.subr.mxu0 %v509_v0 }
  0x39   :  { %452 = vmatpush3.msra.mxu0 %v222_v42 }
  0xd8   :  { %v123_v36 = vpop.f32.mrf.mxu0 }
  0xd9   :  { %v124_v37 = vadd.f32 %v332_v35, %v123_v36 }
  0xda   :  { %v385_v38 = vpop.f32.mrf.mxu0 }
  0xdb   :  { %v127_v39 = vmax.f32 %v124_v37, 0.0 }
  0xdd   :  { %419 = vmatmul.mubr.f32.vlgmr.msra.gmra.mxu1 %v127_v39 }
 0x19d   :  { %v217_v44 = vpop.f32.mrf.mxu1 }
 0x19e   :  { %v218_v45 = vadd.f32 %v334_v43, %v217_v44 }
 0x19f   :  { %v420_v46 = vpop.f32.mrf.mxu1 }
 0x1a0   :  { %v221_v47 = vmax.f32 %v218_v45, 0.0 }
 0x1a2   :  { %454 = vmatmul.mubr.f32.vlgmr.msra.gmra.mxu0 %v221_v47 }
 0x262   :  { %v311_v49 = vpop.f32.mrf.mxu0 }
 0x263   :  { %v312_v50 = vadd.f32 %v335_v48, %v311_v49 }
 0x264   :  { %v455_v51 = vpop.f32.mrf.mxu0 }
 0x265   :  { %316 = vst.msk [vmem:[#allocation5] sm:$0x3] %vm315_vm2, %v312_v50 }
 0x266   :  { %493 = shalt.err (!%p490_p9)
}
 0x267   :  { %326 = dma.vmem_to_hbm [thread:$0]  %s324_s26, 32, %s715_s7, [#allocation4]  }
 0x268   :  { %504 = dma.done.wait [#allocation4], 32  }
 0x269   :  { %505 = vsyncadd [#allocation4], 4294967264 }
 0x26a   :  { %330 = vsyncpa [#allocation3], 1 }
 0x26b   :  { %331 = vsyncpa [#allocation4], 1 }

</bundles_post_ra>
